<compile_context>
chip_gen: v7x
topology: tpu7x:2x2x1
jax: 0.10.0
libtpu: 0.0.40
codegen_flags: <defaults>
</compile_context>

<pallas_src>
import functools

import jax
import jax.numpy as jnp
from jax import lax
from jax.experimental import pallas as pl
from jax.experimental.pallas import tpu as pltpu


def _circconv_kernel(x_ref, w_ref, o_ref, xcol_ref, *, n, n_adj, c_in, ksize, g):
    # x_ref:    (C_in, N*G)        batch-interleaved input slab, column = m*G + b
    # w_ref:    (C_out, K*C_in+1)  flattened taps + bias column (resident)
    # o_ref:    (C_out, N*G)       lane-dense output slab
    # xcol_ref: (K*C_in+1, N*G)    VMEM im2col scratch (+ ones row for the bias)
    kc = ksize * c_in
    width = n * g

    # Bias row: constant ones (single full-width store).
    xcol_ref[kc:kc + 1, :] = jnp.ones((1, width), xcol_ref.dtype)

    # Load the slab once; every tap is a whole-slab XLU roll of this value.
    slab = x_ref[...]
    for t in range(ksize):
        r0 = t * c_in
        # pltpu.roll follows jnp.roll: out[c] = slab[(c - shift) mod W].
        # We need  out[ci, m*G + b] = x[b, ci, (m + t - n_adj) mod N]
        #                           = slab[ci, ((m + t - n_adj) mod N)*G + b]
        # => shift = ((n_adj - t) mod N) * G.  Batch interleave period G keeps
        # the roll from ever mixing batches.
        shift = ((n_adj - t) % n) * g
        if shift == 0:
            xcol_ref[r0:r0 + c_in, :] = slab
        else:
            xcol_ref[r0:r0 + c_in, :] = pltpu.roll(slab, shift, axis=1)

    # One fused MXU matmul for the whole problem, f32 accumulation; the bias is
    # included via the ones row of xcol.
    acc = jnp.dot(w_ref[...], xcol_ref[...], preferred_element_type=jnp.float32)
    o_ref[...] = acc.astype(o_ref.dtype)   # single full-width unmasked store


def pack_circconv_params(weight, bias, dtype=None):
    """One-time weight packing (hoist out of the per-call path).

    W_aug[co, t*C_in + ci] = weight[co, ci, t]; last column = bias[co].
    """
    c_out, c_in, k = weight.shape
    w_flat = jnp.transpose(weight, (0, 2, 1)).reshape(c_out, k * c_in)
    w_aug = jnp.concatenate([w_flat, bias.reshape(c_out, 1)], axis=1)
    return w_aug if dtype is None else w_aug.astype(dtype)


def circ_conv(x_nw, w_aug, n_adj):
    """x_nw: (B, C_in, N); w_aug: (C_out, K*C_in+1) from pack_circconv_params."""
    B, C_in, N = x_nw.shape
    C_out, cols = w_aug.shape
    K = 2 * n_adj + 1
    assert cols == K * C_in + 1
    assert 0 <= n_adj <= N, "circular halo must not exceed the spatial extent"

    # Fold the batch onto the lane axis, interleaved with period G; pad with
    # zero batch slots so the slab is lane-dense (128 lanes at the demo shape,
    # so every load/store is an unmasked full-width vst and the roll width is
    # a native multiple of 128).
    G = max(B, pl.cdiv(128, N))
    width = N * G
    # TODO(synk): large-N path — tile N on a ("parallel") grid axis with a
    #   2*n_adj halo (tiles >=512 lanes, restores double-buffering, shards
    #   across the two v7x TensorCores); size tiles for v7x's 64 MiB VMEM
    #   (~half the v6e tile) and set vmem_limit_bytes explicitly (raise the
    #   16 MiB default on v5e); feed the MXU bf16 on v6e/v7x (cast at the dot,
    #   keep f32 accumulation, keep VPU-side work f32 on v5e).
    x_slots = jnp.zeros((G, C_in, N), x_nw.dtype).at[:B].set(x_nw)
    slab = jnp.transpose(x_slots, (1, 2, 0)).reshape(C_in, width)  # col = m*G + b
    w_aug = w_aug.astype(x_nw.dtype)

    kernel = functools.partial(_circconv_kernel, n=N, n_adj=n_adj,
                               c_in=C_in, ksize=K, g=G)

    out_slab = pl.pallas_call(
        kernel,
        out_shape=jax.ShapeDtypeStruct((C_out, width), x_nw.dtype),
        grid_spec=pltpu.PrefetchScalarGridSpec(
            num_scalar_prefetch=0,
            grid=(1,),  # whole problem is one fused matmul; no per-step overhead
            in_specs=[
                pl.BlockSpec((C_in, width), lambda i: (0, 0)),
                pl.BlockSpec((C_out, K * C_in + 1), lambda i: (0, 0)),
            ],
            out_specs=pl.BlockSpec((C_out, width), lambda i: (0, 0)),
            scratch_shapes=[pltpu.VMEM((K * C_in + 1, width), x_nw.dtype)],
        ),
        compiler_params=pltpu.CompilerParams(
            dimension_semantics=("arbitrary",)),
    )(slab, w_aug)

    # Layout plumbing back to NCW (tiny pure reshape/transpose in XLA).
    out = jnp.transpose(out_slab.reshape(C_out, N, G), (2, 0, 1))[:B]
    return out  # (B, C_out, N)


def _reference(x_nw, weight, bias, n_adj):
    # Pure-JAX reference: circular pad + conv1d (NCW, OIW).
    x_pad = jnp.concatenate(
        [x_nw[..., -n_adj:], x_nw, x_nw[..., :n_adj]], axis=2)
    out = lax.conv_general_dilated(
        x_pad, weight, window_strides=(1,), padding="VALID",
        dimension_numbers=("NCH", "OIH", "NCH"))
    return out + bias[None, :, None]


if __name__ == "__main__":
    key = jax.random.PRNGKey(0)
    B, state_dim, N = 2, 4, 16
    n_adj = 4
    out_state_dim = state_dim
    K = 2 * n_adj + 1

    k_x, k_w, k_b = jax.random.split(key, 3)
    x = jax.random.normal(k_x, (B, state_dim, N), dtype=jnp.float32)
    # Deterministic parameter init (Conv1d weight: (C_out, C_in, K), bias: (C_out,)).
    fan_in = state_dim * K
    bound = 1.0 / (fan_in ** 0.5)
    weight = jax.random.uniform(k_w, (out_state_dim, state_dim, K),
                                minval=-bound, maxval=bound, dtype=jnp.float32)
    bias = jax.random.uniform(k_b, (out_state_dim,),
                              minval=-bound, maxval=bound, dtype=jnp.float32)

    w_aug = pack_circconv_params(weight, bias)   # once, outside the hot path
    run = jax.jit(circ_conv, static_argnums=2)
    out = jax.block_until_ready(run(x, w_aug, n_adj))

    ref = _reference(x, weight, bias, n_adj)
    assert out.shape == (B, out_state_dim, N), out.shape
    assert jnp.allclose(out, ref, atol=1e-5, rtol=1e-5), \
        float(jnp.max(jnp.abs(out - ref)))

    print("KERNEL_OK")
</pallas_src>

<mosaic_0001>
module attributes {stable_mosaic.version = 11 : i64} {
  func.func @_circconv_kernel(%arg0: i32, %arg1: memref<4x128xf32, #tpu.memory_space<vmem>>, %arg2: memref<4x37xf32, #tpu.memory_space<vmem>>, %arg3: memref<4x128xf32, #tpu.memory_space<vmem>>, %arg4: memref<37x128xf32, #tpu.memory_space<vmem>>) attributes {dimension_semantics = [#tpu.dimension_semantics<arbitrary>], iteration_bounds = array<i64: 1>, scalar_prefetch = 0 : i64, scratch_operands = 1 : i64, tpu.core_type = #tpu.core_type<tc>, window_params = [{pipeline_mode = #tpu.pipeline_mode<synchronous>, transform_indices = @transform_0, window_bounds = array<i64: 4, 128>}, {pipeline_mode = #tpu.pipeline_mode<synchronous>, transform_indices = @transform_1, window_bounds = array<i64: 4, 37>}, {pipeline_mode = #tpu.pipeline_mode<synchronous>, transform_indices = @transform_2, window_bounds = array<i64: 4, 128>}]} {
    %cst = arith.constant 1.000000e+00 : f32
    %0 = vector.broadcast %cst : f32 to vector<1x128xf32>
    %c36 = arith.constant 36 : index
    %c0 = arith.constant 0 : index
    %1 = vector.load %arg4[%c36, %c0] : memref<37x128xf32, #tpu.memory_space<vmem>>, vector<1x128xf32>
    tpu.vector_store %arg4[%c36, %c0], %0 {strides = array<i32>} : memref<37x128xf32, #tpu.memory_space<vmem>>, vector<1x128xf32>,
    %c0_0 = arith.constant 0 : index
    %c0_1 = arith.constant 0 : index
    %2 = vector.load %arg1[%c0_0, %c0_1] : memref<4x128xf32, #tpu.memory_space<vmem>>, vector<4x128xf32>
    %c32_i32 = arith.constant 32 : i32
    %3 = tpu.dynamic_rotate %2 by %c32_i32 dim 1 : vector<4x128xf32>, i32 -> vector<4x128xf32>
    %c0_2 = arith.constant 0 : index
    %c0_3 = arith.constant 0 : index
    %4 = vector.load %arg4[%c0_2, %c0_3] : memref<37x128xf32, #tpu.memory_space<vmem>>, vector<4x128xf32>
    tpu.vector_store %arg4[%c0_2, %c0_3], %3 {strides = array<i32>} : memref<37x128xf32, #tpu.memory_space<vmem>>, vector<4x128xf32>,
    %c24_i32 = arith.constant 24 : i32
    %5 = tpu.dynamic_rotate %2 by %c24_i32 dim 1 : vector<4x128xf32>, i32 -> vector<4x128xf32>
    %c4 = arith.constant 4 : index
    %c0_4 = arith.constant 0 : index
    %6 = vector.load %arg4[%c4, %c0_4] : memref<37x128xf32, #tpu.memory_space<vmem>>, vector<4x128xf32>
    tpu.vector_store %arg4[%c4, %c0_4], %5 {strides = array<i32>} : memref<37x128xf32, #tpu.memory_space<vmem>>, vector<4x128xf32>,
    %c16_i32 = arith.constant 16 : i32
    %7 = tpu.dynamic_rotate %2 by %c16_i32 dim 1 : vector<4x128xf32>, i32 -> vector<4x128xf32>
    %c8 = arith.constant 8 : index
    %c0_5 = arith.constant 0 : index
    %8 = vector.load %arg4[%c8, %c0_5] : memref<37x128xf32, #tpu.memory_space<vmem>>, vector<4x128xf32>
    tpu.vector_store %arg4[%c8, %c0_5], %7 {strides = array<i32>} : memref<37x128xf32, #tpu.memory_space<vmem>>, vector<4x128xf32>,
    %c8_i32 = arith.constant 8 : i32
    %9 = tpu.dynamic_rotate %2 by %c8_i32 dim 1 : vector<4x128xf32>, i32 -> vector<4x128xf32>
    %c12 = arith.constant 12 : index
    %c0_6 = arith.constant 0 : index
    %10 = vector.load %arg4[%c12, %c0_6] : memref<37x128xf32, #tpu.memory_space<vmem>>, vector<4x128xf32>
    tpu.vector_store %arg4[%c12, %c0_6], %9 {strides = array<i32>} : memref<37x128xf32, #tpu.memory_space<vmem>>, vector<4x128xf32>,
    %c16 = arith.constant 16 : index
    %c0_7 = arith.constant 0 : index
    %11 = vector.load %arg4[%c16, %c0_7] : memref<37x128xf32, #tpu.memory_space<vmem>>, vector<4x128xf32>
    tpu.vector_store %arg4[%c16, %c0_7], %2 {strides = array<i32>} : memref<37x128xf32, #tpu.memory_space<vmem>>, vector<4x128xf32>,
    %c120_i32 = arith.constant 120 : i32
    %12 = tpu.dynamic_rotate %2 by %c120_i32 dim 1 : vector<4x128xf32>, i32 -> vector<4x128xf32>
    %c20 = arith.constant 20 : index
    %c0_8 = arith.constant 0 : index
    %13 = vector.load %arg4[%c20, %c0_8] : memref<37x128xf32, #tpu.memory_space<vmem>>, vector<4x128xf32>
    tpu.vector_store %arg4[%c20, %c0_8], %12 {strides = array<i32>} : memref<37x128xf32, #tpu.memory_space<vmem>>, vector<4x128xf32>,
    %c112_i32 = arith.constant 112 : i32
    %14 = tpu.dynamic_rotate %2 by %c112_i32 dim 1 : vector<4x128xf32>, i32 -> vector<4x128xf32>
    %c24 = arith.constant 24 : index
    %c0_9 = arith.constant 0 : index
    %15 = vector.load %arg4[%c24, %c0_9] : memref<37x128xf32, #tpu.memory_space<vmem>>, vector<4x128xf32>
    tpu.vector_store %arg4[%c24, %c0_9], %14 {strides = array<i32>} : memref<37x128xf32, #tpu.memory_space<vmem>>, vector<4x128xf32>,
    %c104_i32 = arith.constant 104 : i32
    %16 = tpu.dynamic_rotate %2 by %c104_i32 dim 1 : vector<4x128xf32>, i32 -> vector<4x128xf32>
    %c28 = arith.constant 28 : index
    %c0_10 = arith.constant 0 : index
    %17 = vector.load %arg4[%c28, %c0_10] : memref<37x128xf32, #tpu.memory_space<vmem>>, vector<4x128xf32>
    tpu.vector_store %arg4[%c28, %c0_10], %16 {strides = array<i32>} : memref<37x128xf32, #tpu.memory_space<vmem>>, vector<4x128xf32>,
    %c96_i32 = arith.constant 96 : i32
    %18 = tpu.dynamic_rotate %2 by %c96_i32 dim 1 : vector<4x128xf32>, i32 -> vector<4x128xf32>
    %c32 = arith.constant 32 : index
    %c0_11 = arith.constant 0 : index
    %19 = vector.load %arg4[%c32, %c0_11] : memref<37x128xf32, #tpu.memory_space<vmem>>, vector<4x128xf32>
    tpu.vector_store %arg4[%c32, %c0_11], %18 {strides = array<i32>} : memref<37x128xf32, #tpu.memory_space<vmem>>, vector<4x128xf32>,
    %c0_12 = arith.constant 0 : index
    %c0_13 = arith.constant 0 : index
    %20 = vector.load %arg2[%c0_12, %c0_13] : memref<4x37xf32, #tpu.memory_space<vmem>>, vector<4x37xf32>
    %c0_14 = arith.constant 0 : index
    %c0_15 = arith.constant 0 : index
    %21 = vector.load %arg4[%c0_14, %c0_15] : memref<37x128xf32, #tpu.memory_space<vmem>>, vector<37x128xf32>
    %cst_16 = arith.constant dense<0.000000e+00> : vector<4x128xf32>
    %22 = tpu.matmul %20, %21, %cst_16 {dimension_numbers = #tpu.dot_dimension_numbers<[1], [0], [0], [1], [0, 0, 1, 1], [], []>} : vector<4x37xf32>, vector<37x128xf32>, vector<4x128xf32> -> vector<4x128xf32>
    %c0_17 = arith.constant 0 : index
    %c0_18 = arith.constant 0 : index
    %23 = vector.load %arg3[%c0_17, %c0_18] : memref<4x128xf32, #tpu.memory_space<vmem>>, vector<4x128xf32>
    tpu.vector_store %arg3[%c0_17, %c0_18], %22 {strides = array<i32>} : memref<4x128xf32, #tpu.memory_space<vmem>>, vector<4x128xf32>,
    return
  }
  func.func @transform_0(%arg0: i32) -> (i32, i32) {
    %c0_i32 = arith.constant 0 : i32
    %c0_i32_0 = arith.constant 0 : i32
    %c0_i32_1 = arith.constant 0 : i32
    return %c0_i32, %c0_i32_0 : i32, i32
  }
  func.func @transform_1(%arg0: i32) -> (i32, i32) {
    %c0_i32 = arith.constant 0 : i32
    %c0_i32_0 = arith.constant 0 : i32
    %c0_i32_1 = arith.constant 0 : i32
    return %c0_i32, %c0_i32_0 : i32, i32
  }
  func.func @transform_2(%arg0: i32) -> (i32, i32) {
    %c0_i32 = arith.constant 0 : i32
    %c0_i32_0 = arith.constant 0 : i32
    %c0_i32_1 = arith.constant 0 : i32
    return %c0_i32, %c0_i32_0 : i32, i32
  }
}

</mosaic_0001>

<bundles_post_ra>
// kernel: circ_conv.1
= control target key start
LH: loop header
LB: loop body
LE: loop exit
PB: predicated region body
PF: predicated region fallthrough
CT: control target
= control target key end

     0   :  { %s166_s11 = smov 16   ;;  %s167_s12 = smov 32   ;;  %v168_v1 = vmov 0.0|0.0   ;;  %v171_v2 = vmov 1.0   ;;  %vm176_vm0 = vmmov 0   ;;  %v177_v3 = vmov 0.0   ;;  %s202_s0 = inlined_call_operand.vmem [shape: f32[4,128], index: 0, kind: input, shape index: {}]   ;;  %s203_s1 = inlined_call_operand.vmem [shape: f32[4,37], index: 1, kind: input, shape index: {}]   ;;  %s204_s2 = inlined_call_operand.vmem [shape: f32[4,128], index: 2, kind: output, shape index: {}]  }
   0x1   :  { %v12_v0 = vld [vmem:[%s202_s0] sm:$0xf]  ;;  %148 = vmatprep.subr.bf16.mxu0 %v168_v1  ;;  %s169_s13 = smov 8   ;;  %s170_s14 = smov 24   ;;  %11 = vst [vmem:[#allocation2 + $0x24] sm:$0x1] %v171_v2  ;;  %145 = vmatprep.mubr.msk.f32.mxu0 %vm176_vm0, %v177_v3 }
   0x2   :  { %19 = vrot.lane.b32.xlu1 %v12_v0, %s166_s11  ;;  %25 = vst [vmem:[#allocation2 + $0x10] sm:$0xf] %v12_v0  ;;  %13 = vrot.lane.b32.xlu0 %v12_v0, %s167_s12  ;;  %s172_s15 = smov 120   ;;  %s173_s16 = smov 112   ;;  %vm48_vm1 = vcmask 1044480   ;;  %vm44_vm2 = vcmask 302080  }
   0x3   :  { %s174_s17 = smov 104   ;;  %s175_s0 = smov 96   ;;  %v38_v19 = vld [vmem:[%s203_s1] sm:$0xf] }
   0x6   :  { %22 = vrot.lane.b32.xlu1 %v12_v0, %s169_s13  ;;  %16 = vrot.lane.b32.xlu0 %v12_v0, %s170_s14 }
   0xa   :  { %26 = vrot.lane.b32.xlu0 %v12_v0, %s172_s15  ;;  %29 = vrot.lane.b32.xlu1 %v12_v0, %s173_s16 }
   0xe   :  { %32 = vrot.lane.b32.xlu0 %v12_v0, %s174_s17  ;;  %35 = vrot.lane.b32.xlu1 %v12_v0, %s175_s0 }
  0x74   :  { %v20_v4 = vpop.permute.xlu1 %19  ;;  %v14_v5 = vpop.permute.xlu0 %13 }
  0x75   :  { %21 = vst [vmem:[#allocation2 + $0x8] sm:$0xf] %v20_v4  ;;  %15 = vst [vmem:[#allocation2] sm:$0xf] %v14_v5 }
  0x78   :  { %v23_v6 = vpop.permute.xlu1 %22  ;;  %v17_v7 = vpop.permute.xlu0 %16 }
  0x79   :  { %24 = vst [vmem:[#allocation2 + $0xc] sm:$0xf] %v23_v6  ;;  %18 = vst [vmem:[#allocation2 + $0x4] sm:$0xf] %v17_v7 }
  0x7c   :  { %v27_v8 = vpop.permute.xlu0 %26  ;;  %v30_v9 = vpop.permute.xlu1 %29 }
  0x7d   :  { %28 = vst [vmem:[#allocation2 + $0x14] sm:$0xf] %v27_v8  ;;  %31 = vst [vmem:[#allocation2 + $0x18] sm:$0xf] %v30_v9 }
  0x80   :  { %v33_v10 = vpop.permute.xlu0 %32  ;;  %v39_v11 = vld [vmem:[#allocation2] sm:$0xff]  ;;  %v40_v12 = vld [vmem:[#allocation2 + $0x8] sm:$0xff]  ;;  %v36_v13 = vpop.permute.xlu1 %35 }
  0x81   :  { %34 = vst [vmem:[#allocation2 + $0x1c] sm:$0xf] %v33_v10  ;;  %v149_v14 = vpack.c.bf16 %v40_v12, %v39_v11  ;;  %37 = vst [vmem:[#allocation2 + $0x20] sm:$0xf] %v36_v13 }
  0x83   :  { %150 = vmatpush3.bf16.msra.mxu0 %v149_v14 }
  0x84   :  { %151 = vmatprep.subr.bf16.mxu0 %v168_v1  ;;  %v41_v15 = vld [vmem:[#allocation2 + $0x10] sm:$0xff] }
  0x88   :  { %v42_v16 = vld [vmem:[#allocation2 + $0x18] sm:$0xff]  ;;  %v43_v18 = vld [vmem:[#allocation2 + $0x20] sm:$0x1f] }
  0x89   :  { %v152_v17 = vpack.c.bf16 %v42_v16, %v41_v15 }
  0x8b   :  { %153 = vmatpush3.bf16.msra.mxu0 %v152_v17 }
  0x8c   :  { %143 = vmatprep.subr.mxu0 %v177_v3 }
  0x8f   :  { %144 = vmatpush3.msk.msra.mxu0 %vm48_vm1, %v43_v18 }
  0x90   :  { %146 = vmatmul.mubr.msk.f32.vlgmr.msra.gmra.mrb[0].mxu0 %vm44_vm2, %v38_v19 }
 0x163   :  { %v118_v20 = vpop.f32.mrb[0].mxu0 }
 0x164   :  { %122 = vst [vmem:[%s204_s2] sm:$0xf] %v118_v20  ;;  %v147_v21 = vpop.f32.mrb[1].mxu0 }

</bundles_post_ra>
